<compile_context>
chip_gen: v7x
topology: tpu7x:2x2x1
jax: 0.10.0
libtpu: 0.0.40
codegen_flags: <defaults>
</compile_context>

<pallas_src>
import jax
import jax.numpy as jnp
from jax.experimental import pallas as pl
from jax.experimental.pallas import tpu as pltpu


def _upsample_kernel(x_ref, w_ref, b_ref, o_ref):
    # x_ref: (1, TH*W, Cin)         TH fused image rows, NHWC flattened over (h, w)
    # w_ref: (Cin, Cout)            1x1 conv weight with BN scale folded in
    # b_ref: (1, Cout)              BN bias = beta - mean * scale
    # o_ref: (1, TH, 2, W, 2*Cout)  output slab; dims = (th, dh, w, [dw, c])
    th, _, w_sz, two_cout = o_ref.shape[1:]

    x = x_ref[0]                                                      # (TH*W, Cin)
    y = jnp.dot(x, w_ref[...], preferred_element_type=jnp.float32)    # 1x1 conv (MXU)
    y = y + b_ref[...]                                                # folded BatchNorm
    y = jnp.where(y > 0.0, y, 0.1 * y)                                # LeakyReLU(0.1)
    y = y.astype(o_ref.dtype)

    # width duplication: lane index becomes dw*Cout + c   -> (TH*W, 2*Cout)
    y2 = jnp.concatenate([y, y], axis=-1)
    # split fused rows back to (TH, W, 2*Cout); minor dim unchanged -> no relayout
    y3 = y2.reshape(th, w_sz, two_cout)
    # height duplication + single wide store for the whole block
    o_ref[0] = jnp.broadcast_to(y3[:, None, :, :], (th, 2, w_sz, two_cout))


def _pick_tile_h(H, W, target_positions=2048):
    """Pick TH (rows fused per grid step): ~2048 spatial positions per step keeps the
    double-buffered output block a few MB of VMEM on every TPU generation."""
    th = min(H, max(1, target_positions // max(W, 1)))
    while th > 1 and (H % th != 0 or (th * W) % 8 != 0):
        th -= 1
    if H % th != 0 or (th * W) % 8 != 0:
        th = H  # full-extent block is always a legal block shape
    return th


def upsample_forward(x_nchw, conv_w_oihw, gamma, beta, run_mean, run_var, eps=1e-5):
    """Forward pass of `Upsample`, input/output in NCHW (like PyTorch)."""
    N, Cin, H, W = x_nchw.shape
    Cout = conv_w_oihw.shape[0]
    th = _pick_tile_h(H, W)

    # ---- parameter folding: BN scale folded into the conv weight ----
    scale = gamma / jnp.sqrt(run_var + eps)                                    # (Cout,)
    w = (jnp.transpose(conv_w_oihw[:, :, 0, 0], (1, 0)) * scale[None, :])      # (Cin, Cout)
    bias = (beta - run_mean * scale).reshape(1, Cout)
    w = w.astype(jnp.float32)
    bias = bias.astype(jnp.float32)

    # ---- input glue: NCHW -> NHWC (one pass over the small input), flatten (h, w) = free view ----
    x_flat = jnp.transpose(x_nchw, (0, 2, 3, 1)).reshape(N, H * W, Cin)

    out5 = pl.pallas_call(
        _upsample_kernel,
        out_shape=jax.ShapeDtypeStruct((N, H, 2, W, 2 * Cout), x_nchw.dtype),
        grid_spec=pltpu.PrefetchScalarGridSpec(
            num_scalar_prefetch=0,
            grid=(N, H // th),
            in_specs=[
                pl.BlockSpec((1, th * W, Cin), lambda n, hb: (n, hb, 0)),
                pl.BlockSpec((Cin, Cout), lambda n, hb: (0, 0)),
                pl.BlockSpec((1, Cout), lambda n, hb: (0, 0)),
            ],
            out_specs=pl.BlockSpec(
                (1, th, 2, W, 2 * Cout), lambda n, hb: (n, hb, 0, 0, 0)
            ),
        ),
        compiler_params=pltpu.CompilerParams(
            dimension_semantics=("parallel", "parallel"),
            vmem_limit_bytes=32 * 1024 * 1024,
        ),
    )(x_flat, w, bias)

    # out5[n, h, dh, w, dw*Cout + c] == act[n, h, w, c]
    out6 = out5.reshape(N, H, 2, W, 2, Cout)                         # free view
    # single materializing pass: interleave + channel-first in ONE transpose
    out_nchw = jnp.transpose(out6, (0, 5, 1, 2, 3, 4)).reshape(N, Cout, 2 * H, 2 * W)
    return out_nchw


def reference_forward(x_nchw, conv_w_oihw, gamma, beta, run_mean, run_var, eps=1e-5):
    """Plain-JAX reference matching the PyTorch module (eval-mode BN)."""
    y = jnp.einsum("nchw,oc->nohw", x_nchw, conv_w_oihw[:, :, 0, 0])
    scale = gamma / jnp.sqrt(run_var + eps)
    shift = beta - run_mean * scale
    y = y * scale[None, :, None, None] + shift[None, :, None, None]
    y = jnp.where(y > 0.0, y, 0.1 * y)
    y = jnp.repeat(jnp.repeat(y, 2, axis=2), 2, axis=3)
    return y


if __name__ == "__main__":
    # Small shapes consistent with the module: batch=2, in_channels=4, out_channels=8, spatial=16
    N, Cin, Cout, H, W = 2, 4, 8, 16, 16

    key = jax.random.PRNGKey(0)
    k_x, k_w, k_g, k_b, k_m, k_v = jax.random.split(key, 6)

    x = jax.random.normal(k_x, (N, Cin, H, W), dtype=jnp.float32)
    conv_w = jax.random.normal(k_w, (Cout, Cin, 1, 1), dtype=jnp.float32) * 0.1
    gamma = 1.0 + 0.1 * jax.random.normal(k_g, (Cout,), dtype=jnp.float32)
    beta = 0.1 * jax.random.normal(k_b, (Cout,), dtype=jnp.float32)
    run_mean = 0.1 * jax.random.normal(k_m, (Cout,), dtype=jnp.float32)
    run_var = jax.random.uniform(k_v, (Cout,), dtype=jnp.float32, minval=0.5, maxval=1.5)

    out = upsample_forward(x, conv_w, gamma, beta, run_mean, run_var)
    out = jax.block_until_ready(out)

    ref = reference_forward(x, conv_w, gamma, beta, run_mean, run_var)
    assert out.shape == (N, Cout, 2 * H, 2 * W), out.shape
    assert jnp.allclose(out, ref, rtol=1e-5, atol=1e-5), "mismatch vs reference"

    print("KERNEL_OK")
</pallas_src>

<mosaic_0001>
module attributes {stable_mosaic.version = 11 : i64} {
  func.func @_upsample_kernel(%arg0: i32, %arg1: i32, %arg2: memref<1x256x4xf32, #tpu.memory_space<vmem>>, %arg3: memref<4x8xf32, #tpu.memory_space<vmem>>, %arg4: memref<1x8xf32, #tpu.memory_space<vmem>>, %arg5: memref<1x16x2x16x16xf32, #tpu.memory_space<vmem>>) attributes {dimension_semantics = [#tpu.dimension_semantics<parallel>, #tpu.dimension_semantics<parallel>], iteration_bounds = array<i64: 2, 1>, scalar_prefetch = 0 : i64, scratch_operands = 0 : i64, tpu.core_type = #tpu.core_type<tc>, window_params = [{transform_indices = @transform_0, window_bounds = array<i64: 1, 256, 4>}, {pipeline_mode = #tpu.pipeline_mode<synchronous>, transform_indices = @transform_1, window_bounds = array<i64: 4, 8>}, {pipeline_mode = #tpu.pipeline_mode<synchronous>, transform_indices = @transform_2, window_bounds = array<i64: 1, 8>}, {transform_indices = @transform_3, window_bounds = array<i64: 1, 16, 2, 16, 16>}]} {
    %c0 = arith.constant 0 : index
    %c0_0 = arith.constant 0 : index
    %c0_1 = arith.constant 0 : index
    %0 = vector.load %arg2[%c0, %c0_0, %c0_1] : memref<1x256x4xf32, #tpu.memory_space<vmem>>, vector<1x256x4xf32>
    %1 = vector.shape_cast %0 : vector<1x256x4xf32> to vector<256x4xf32>
    %c0_2 = arith.constant 0 : index
    %c0_3 = arith.constant 0 : index
    %2 = vector.load %arg3[%c0_2, %c0_3] : memref<4x8xf32, #tpu.memory_space<vmem>>, vector<4x8xf32>
    %cst = arith.constant dense<0.000000e+00> : vector<256x8xf32>
    %3 = tpu.matmul %1, %2, %cst {dimension_numbers = #tpu.dot_dimension_numbers<[1], [0], [0], [1], [0, 0, 1, 1], [], []>} : vector<256x4xf32>, vector<4x8xf32>, vector<256x8xf32> -> vector<256x8xf32>
    %c0_4 = arith.constant 0 : index
    %c0_5 = arith.constant 0 : index
    %4 = vector.load %arg4[%c0_4, %c0_5] : memref<1x8xf32, #tpu.memory_space<vmem>>, vector<1x8xf32>
    %5 = vector.broadcast %4 : vector<1x8xf32> to vector<256x8xf32>
    %6 = arith.addf %3, %5 : vector<256x8xf32>
    %cst_6 = arith.constant 0.000000e+00 : f32
    %7 = vector.broadcast %cst_6 : f32 to vector<256x8xf32>
    %8 = arith.cmpf ogt, %6, %7 : vector<256x8xf32>
    %cst_7 = arith.constant 1.000000e-01 : f32
    %9 = vector.broadcast %cst_7 : f32 to vector<256x8xf32>
    %10 = arith.mulf %9, %6 : vector<256x8xf32>
    %11 = arith.select %8, %6, %10 : vector<256x8xi1>, vector<256x8xf32>
    %12 = tpu.concatenate %11, %11 in 1 : vector<256x8xf32>, vector<256x8xf32> -> vector<256x16xf32>
    %13 = vector.shape_cast %12 : vector<256x16xf32> to vector<16x16x16xf32>
    %14 = vector.shape_cast %13 : vector<16x16x16xf32> to vector<16x1x16x16xf32>
    %15 = vector.shape_cast %14 : vector<16x1x16x16xf32> to vector<16x1x16x16xf32>
    %16 = vector.broadcast %15 : vector<16x1x16x16xf32> to vector<16x2x16x16xf32>
    %c0_8 = arith.constant 0 : index
    %c0_9 = arith.constant 0 : index
    %c0_10 = arith.constant 0 : index
    %c0_11 = arith.constant 0 : index
    %c0_12 = arith.constant 0 : index
    %17 = vector.load %arg5[%c0_8, %c0_9, %c0_10, %c0_11, %c0_12] : memref<1x16x2x16x16xf32, #tpu.memory_space<vmem>>, vector<1x16x2x16x16xf32>
    %18 = vector.shape_cast %17 : vector<1x16x2x16x16xf32> to vector<16x2x16x16xf32>
    %19 = vector.shape_cast %16 : vector<16x2x16x16xf32> to vector<1x16x2x16x16xf32>
    tpu.vector_store %arg5[%c0_8, %c0_9, %c0_10, %c0_11, %c0_12], %19 {strides = array<i32>} : memref<1x16x2x16x16xf32, #tpu.memory_space<vmem>>, vector<1x16x2x16x16xf32>,
    return
  }
  func.func @transform_0(%arg0: i32, %arg1: i32) -> (i32, i32, i32) {
    %c0_i32 = arith.constant 0 : i32
    %c0_i32_0 = arith.constant 0 : i32
    return %arg0, %arg1, %c0_i32 : i32, i32, i32
  }
  func.func @transform_1(%arg0: i32, %arg1: i32) -> (i32, i32) {
    %c0_i32 = arith.constant 0 : i32
    %c0_i32_0 = arith.constant 0 : i32
    %c0_i32_1 = arith.constant 0 : i32
    return %c0_i32, %c0_i32_0 : i32, i32
  }
  func.func @transform_2(%arg0: i32, %arg1: i32) -> (i32, i32) {
    %c0_i32 = arith.constant 0 : i32
    %c0_i32_0 = arith.constant 0 : i32
    %c0_i32_1 = arith.constant 0 : i32
    return %c0_i32, %c0_i32_0 : i32, i32
  }
  func.func @transform_3(%arg0: i32, %arg1: i32) -> (i32, i32, i32, i32, i32) {
    %c0_i32 = arith.constant 0 : i32
    %c0_i32_0 = arith.constant 0 : i32
    %c0_i32_1 = arith.constant 0 : i32
    %c0_i32_2 = arith.constant 0 : i32
    return %arg0, %arg1, %c0_i32, %c0_i32_0, %c0_i32_1 : i32, i32, i32, i32, i32
  }
}

</mosaic_0001>

<bundles_post_ra>
// kernel: tpu_custom_call.1
= control target key start
LH: loop header
LB: loop body
LE: loop exit
PB: predicated region body
PF: predicated region fallthrough
CT: control target
= control target key end

     0   :  { %8 = vsyncpa [#allocation3], 0  ;;  %s1836_s0 = inlined_call_operand.vmem [shape: f32[2,256,4], index: 0, kind: input, shape index: {}]   ;;  %s1837_s1 = inlined_call_operand.vmem [shape: f32[4,8], index: 1, kind: input, shape index: {}]   ;;  %s1838_s2 = inlined_call_operand.vmem [shape: f32[1,8], index: 2, kind: input, shape index: {}]   ;;  %s1839_s3 = inlined_call_operand.hbm [shape: f32[2,16,2,16,16], index: 3, kind: output, shape index: {}]  }
   0x1   :  { %10 = vsyncpa [#allocation3 + $0x1], 0  ;;  %s1278_s12 = smov 0   ;;  %s1280_s13 = smov 0  }
   0x2   :  { %s1282_s14 = smov 0   ;;  %s1284_s15 = smov 0  }
   0x3   :  { %s1286_s16 = smov 0   ;;  %s1288_s17 = smov 0  }
   0x4 LB: > { %s984_s18 = sadd.s32 4294967295, %s1253_s17   ;;  %s985_s19 = sadd.s32 4294967294, %s1253_s17   ;;  %s1253_s17 = sphi %s1288_s17, %s16_s17   ;;  %s1249_s16 = sphi %s1286_s16, %s1846_s16   ;;  %s1245_s15 = sphi %s1284_s15, %s1845_s15   ;;  %s1241_s14 = sphi %s1282_s14, %s1844_s14   ;;  %s1237_s13 = sphi %s1280_s13, %s1843_s13   ;;  %s1233_s12 = sphi %s1278_s12, %s1842_s12  }
   0x5   : > { %s28_s20 = sadd.s32 1, %s1249_s16  ;;  %s107_s21 = sadd.s32 1, %s1241_s14 }
   0x6   : > { %p30_p0 = scmp.ge.s32.totalorder %s28_s20, 2  ;;  %p117_p1 = scmp.ne.s32.totalorder %s1241_s14, %s1237_s13 }
   0x7   : > { %p118_p2 = scmp.eq.s32.totalorder %s984_s18, 1  ;;  %p123_p3 = scmp.ne.s32.totalorder %s1237_s13, %s1233_s12 }
   0x8   : > { %s1848_s20 = smov (%p30_p0, %s28_s20), 0  ;;  %p124_p5 = scmp.eq.s32.totalorder %s985_s19, 1 }
   0x9   : > { %p1318_p4 = por %p118_p2, %p117_p1  ;;  %s102_s23 = ssub.s32 %s1249_s16, %s1848_s20 }
   0xa   : > { %p988_p6 = scmp.ge.s32.totalorder %s1253_s17, 1  ;;  %p105_p7 = scmp.eq.s32.totalorder %s102_s23, 0 }
   0xb   : > { %p1325_p8 = por %p124_p5, %p123_p3  ;;  %p161_p9 = scmp.lt.s32.totalorder %s1253_s17, 3 }
   0xc   : > { %s1331_s25 = scalar_select %p105_p7, %s1241_s14, %s107_s21  }
   0xd   : > { %p162_p10 = pnand %p988_p6, %p161_p9 }
   0xe   : > { %v232_v0 = vld [vmem:[%s1837_s1] sm:$0xf] (!%p162_p10)  ;;  %vm337_vm0 = vcmask (!%p162_p10), 1043456   ;;  %p190_p11 = scmp.lt.s32.totalorder (!%p162_p10), %s1245_s15, 1  ;;  %vm240_vm1 = vcmask (!%p162_p10), 31744   ;;  %s1255_s8 = smov (!%p162_p10), 8  }
   0xf   : > { %165 = sbr.rel (%p162_p10) target bundleno = 437 (0x1b5), region = 32  ;;  %1066 = vmatprep.subr.msk.mxu0 (!%p162_p10), %vm337_vm0, %v232_v0  ;;  %1116 = vmatprep.subr.msk.mxu1 (!%p162_p10), %vm337_vm0, %v232_v0  ;;  %v1410_v33 = vld [vmem:[%s1838_s2] ss:$0 sm:$0xff] (!%p162_p10)  ;;  %s186_s9 = sand.u32 (!%p162_p10), 1, %s1237_s13  }
  0x10   : > { %1067 = vmatpush3.msk.msra.mxu0 (!%p162_p10), %vm337_vm0, %v232_v0  ;;  %1117 = vmatpush3.msk.msra.mxu1 (!%p162_p10), %vm337_vm0, %v232_v0  ;;  %s989_s10 = sshll.u32 (!%p162_p10), %s186_s9, 9  ;;  %s1032_s18 = sshll.u32 (!%p162_p10), %s1245_s15, 13 }
  0x11   : > { %s1588_s11 = scalar_lea.vmem (!%p162_p10), [#allocation2], %s989_s10  ;;  %s1771_s23 = scalar_lea.hbm (!%p162_p10), %s1839_s3, %s1032_s18 }
  0x12   : > { %s905_s19 = sshll.u32 (!%p162_p10), %s1588_s11, 4  ;;  %s1789_s26 = scalar_lea.sflag (!%p162_p10), [#allocation3], %s186_s9  ;;  %s1773_s19 = int_to_ptr.vmem [resolvable:$true] %s905_s19 }
  0x13   : > { %s1175_s27 = scalar_lea.vmem (!%p162_p10), %s1773_s19, 8192 }
  0x14   : > { %p1176_p12 = scmp.ne.s32.totalorder (!%p162_p10), %s1773_s19, %s1175_s27 }
  0x16   : > { %s191_s28 = scalar_select %p190_p11, %s1245_s15, 1 }
  0x17   : > { %p1177_p13 = pnand %p1176_p12, %p1318_p4 }
  0x18   : > { %s1031_s29 = sshll.u32 %s191_s28, 8  ;;  %s1256_s28 = smov [#allocation2]  }
  0x19   : > { %s1341_s5 = scalar_lea.vmem %s1836_s0, %s1031_s29  ;;  %p1178_p0 = pneg %p1177_p13 }
  0x1a   : > { %v200_v1 = vld [vmem:[%s1341_s5] sm:$0xff]  ;;  %v201_v3 = vld [vmem:[%s1341_s5 + $0x8] sm:$0xff]  ;;  %v202_v5 = vld [vmem:[%s1341_s5 + $0x10] sm:$0xff]  ;;  %s1179_s29 = sshll.u32 %s1256_s28, 4  ;;  %s1180_s29 = int_to_ptr.vmem [resolvable:$false] %s1179_s29 }
  0x1b   : > { %v216_v2 = vld [vmem:[%s1341_s5 + $0x80] sm:$0xff]  ;;  %1068 = vmatprep.mubr.msk.f32.mxu0 %vm240_vm1, %v200_v1  ;;  %v217_v4 = vld [vmem:[%s1341_s5 + $0x88] sm:$0xff]  ;;  %v218_v6 = vld [vmem:[%s1341_s5 + $0x90] sm:$0xff]  ;;  %s1181_s30 = scalar_lea.vmem %s1180_s29, 16384  ;;  %p1182_p1 = scmp.lt.s32.totalorder %s1773_s19, %s1180_s29 }
  0x1c   : > { %1092 = vmatprep.mubr.msk.f32.mxu1 %vm240_vm1, %v216_v2  ;;  %1069 = vmatmul.mubr.msk.f32.vlgmr.msra.gmra.mrb[0].mxu0 %vm240_vm1, %v201_v3  ;;  %v203_v7 = vld [vmem:[%s1341_s5 + $0x18] sm:$0xff]  ;;  %v204_v9 = vld [vmem:[%s1341_s5 + $0x20] sm:$0xff]  ;;  %v205_v11 = vld [vmem:[%s1341_s5 + $0x28] sm:$0xff]  ;;  %p1183_p2 = scmp.lt.s32.totalorder %s1181_s30, %s1175_s27 }
  0x1d   : > { %1093 = vmatmul.mubr.msk.f32.vlgmr.msra.gmra.mrb[0].mxu1 %vm240_vm1, %v217_v4  ;;  %1071 = vmatprep.mubr.msk.f32.mxu0 %vm240_vm1, %v202_v5  ;;  %v219_v8 = vld [vmem:[%s1341_s5 + $0x98] sm:$0xff]  ;;  %v220_v10 = vld [vmem:[%s1341_s5 + $0xa0] sm:$0xff]  ;;  %v221_v12 = vld [vmem:[%s1341_s5 + $0xa8] sm:$0xff] }
  0x1e   : > { %1095 = vmatprep.mubr.msk.f32.mxu1 %vm240_vm1, %v218_v6  ;;  %v206_v13 = vld [vmem:[%s1341_s5 + $0x30] sm:$0xff]  ;;  %v207_v15 = vld [vmem:[%s1341_s5 + $0x38] sm:$0xff]  ;;  %v208_v17 = vld [vmem:[%s1341_s5 + $0x40] sm:$0xff]  ;;  %p1184_p3 = por %p1183_p2, %p1182_p1 }
  0x1f   : > { %v222_v14 = vld [vmem:[%s1341_s5 + $0xb0] sm:$0xff]  ;;  %v223_v16 = vld [vmem:[%s1341_s5 + $0xb8] sm:$0xff]  ;;  %v224_v18 = vld [vmem:[%s1341_s5 + $0xc0] sm:$0xff] }
  0x20   : > { %1072 = vmatmul.mubr.msk.f32.gmra.mrb[2].mxu0 %vm240_vm1, %v203_v7  ;;  %v209_v19 = vld [vmem:[%s1341_s5 + $0x48] sm:$0xff]  ;;  %v210_v21 = vld [vmem:[%s1341_s5 + $0x50] sm:$0xff]  ;;  %v211_v23 = vld [vmem:[%s1341_s5 + $0x58] sm:$0xff]  ;;  %p1185_p5 = pnand %p1184_p3, %p1178_p0 }
  0x21   : > { %1096 = vmatmul.mubr.msk.f32.gmra.mrb[2].mxu1 %vm240_vm1, %v219_v8  ;;  %1074 = vmatprep.mubr.msk.f32.mxu0 %vm240_vm1, %v204_v9  ;;  %v225_v20 = vld [vmem:[%s1341_s5 + $0xc8] sm:$0xff]  ;;  %v226_v22 = vld [vmem:[%s1341_s5 + $0xd0] sm:$0xff]  ;;  %v227_v24 = vld [vmem:[%s1341_s5 + $0xd8] sm:$0xff] }
  0x22   : > { %1098 = vmatprep.mubr.msk.f32.mxu1 %vm240_vm1, %v220_v10  ;;  %v212_v25 = vld [vmem:[%s1341_s5 + $0x60] sm:$0xff]  ;;  %v213_v27 = vld [vmem:[%s1341_s5 + $0x68] sm:$0xff]  ;;  %v214_v29 = vld [vmem:[%s1341_s5 + $0x70] sm:$0xff] }
  0x23   : > { %v228_v26 = vld [vmem:[%s1341_s5 + $0xe0] sm:$0xff]  ;;  %v229_v28 = vld [vmem:[%s1341_s5 + $0xe8] sm:$0xff]  ;;  %v230_v30 = vld [vmem:[%s1341_s5 + $0xf0] sm:$0xff] }
  0x24   : > { %1075 = vmatmul.mubr.msk.f32.gmra.mrb[4].mxu0 %vm240_vm1, %v205_v11  ;;  %v215_v31 = vld [vmem:[%s1341_s5 + $0x78] sm:$0xff] }
  0x25   : > { %1099 = vmatmul.mubr.msk.f32.gmra.mrb[4].mxu1 %vm240_vm1, %v221_v12  ;;  %1077 = vmatprep.mubr.msk.f32.mxu0 %vm240_vm1, %v206_v13  ;;  %v231_v32 = vld [vmem:[%s1341_s5 + $0xf8] sm:$0xff] }
  0x26   : > { %1101 = vmatprep.mubr.msk.f32.mxu1 %vm240_vm1, %v222_v14 }
  0x28   : > { %1078 = vmatmul.mubr.msk.f32.gmra.mrb[6].mxu0 %vm240_vm1, %v207_v15 }
  0x29   : > { %1102 = vmatmul.mubr.msk.f32.gmra.mrb[6].mxu1 %vm240_vm1, %v223_v16  ;;  %1080 = vmatprep.mubr.msk.f32.mxu0 %vm240_vm1, %v208_v17 }
  0x2a   : > { %1104 = vmatprep.mubr.msk.f32.mxu1 %vm240_vm1, %v224_v18 }
  0x2c   : > { %1081 = vmatmul.mubr.msk.f32.gmra.mrb[8].mxu0 %vm240_vm1, %v209_v19 }
  0x2d   : > { %1105 = vmatmul.mubr.msk.f32.gmra.mrb[8].mxu1 %vm240_vm1, %v225_v20  ;;  %1083 = vmatprep.mubr.msk.f32.mxu0 %vm240_vm1, %v210_v21 }
  0x2e   : > { %1107 = vmatprep.mubr.msk.f32.mxu1 %vm240_vm1, %v226_v22 }
  0x30   : > { %1084 = vmatmul.mubr.msk.f32.gmra.mrb[10].mxu0 %vm240_vm1, %v211_v23 }
  0x31   : > { %1108 = vmatmul.mubr.msk.f32.gmra.mrb[10].mxu1 %vm240_vm1, %v227_v24  ;;  %1086 = vmatprep.mubr.msk.f32.mxu0 %vm240_vm1, %v212_v25 }
  0x32   : > { %1110 = vmatprep.mubr.msk.f32.mxu1 %vm240_vm1, %v228_v26 }
  0x34   : > { %1087 = vmatmul.mubr.msk.f32.gmra.mrb[12].mxu0 %vm240_vm1, %v213_v27 }
  0x35   : > { %1111 = vmatmul.mubr.msk.f32.gmra.mrb[12].mxu1 %vm240_vm1, %v229_v28  ;;  %1089 = vmatprep.mubr.msk.f32.mxu0 %vm240_vm1, %v214_v29 }
  0x36   : > { %1113 = vmatprep.mubr.msk.f32.mxu1 %vm240_vm1, %v230_v30 }
  0x38   : > { %1090 = vmatmul.mubr.msk.f32.gmra.mrb[14].mxu0 %vm240_vm1, %v215_v31 }
  0x39   : > { %1114 = vmatmul.mubr.msk.f32.gmra.mrb[14].mxu1 %vm240_vm1, %v231_v32 }
  0xef   : > { %v1070_v34 = vpop.f32.mrb[0].mxu0 }
  0xf0   : > { %v1094_v35 = vpop.f32.mrb[0].mxu1  ;;  %v413_v36 = vadd.f32 %v1070_v34, %v1410_v33  ;;  %v407_v38 = vpop.f32.mrb[1].mxu0 }
  0xf1   : > { %v493_v37 = vadd.f32 %v1094_v35, %v1410_v33  ;;  %v487_v39 = vpop.f32.mrb[1].mxu1  ;;  %v408_v40 = vadd.f32 %v1410_v33, %v407_v38 }
  0xf2   : > { %vm567_vm3 = vcmp.gt.f32.partialorder %v413_v36, 0.0  ;;  %v599_v42 = vmul.f32 0.1, %v413_v36  ;;  %v488_v44 = vadd.f32 %v1410_v33, %v487_v39 }
  0xf3   : > { %vm583_vm2 = vcmp.gt.f32.partialorder %v493_v37, 0.0  ;;  %v615_v41 = vmul.f32 0.1, %v493_v37  ;;  %v598_v43 = vmul.f32 0.1, %v408_v40  ;;  %v1073_v45 = vpop.f32.mrb[2].mxu0 }
  0xf4   : > { %v1097_v46 = vpop.f32.mrb[2].mxu1  ;;  %v423_v47 = vadd.f32 %v1073_v45, %v1410_v33  ;;  %v417_v48 = vpop.f32.mrb[3].mxu0  ;;  %v1420_v52 = vsel %vm567_vm3, %v413_v36, %v599_v42  ;;  %vm566_vm4 = vcmp.gt.f32.partialorder %v408_v40, 0.0  ;;  %v614_v54 = vmul.f32 0.1, %v488_v44 }
  0xf5   : > { %v503_v49 = vadd.f32 %v1097_v46, %v1410_v33  ;;  %v1418_v50 = vsel %vm583_vm2, %v493_v37, %v615_v41  ;;  %v497_v51 = vpop.f32.mrb[3].mxu1  ;;  %696 = vrot.lane.b32.xlu0 %v1420_v52, %s1255_s8  ;;  %v418_v55 = vadd.f32 %v1410_v33, %v417_v48  ;;  %v1430_v60 = vsel %vm566_vm4, %v408_v40, %v598_v43 }
  0xf6   : > { %728 = vrot.lane.b32.xlu1 %v1418_v50, %s1255_s8  ;;  %v601_v53 = vmul.f32 0.1, %v423_v47  ;;  %vm569_vm5 = vcmp.gt.f32.partialorder %v423_v47, 0.0  ;;  %v498_v56 = vadd.f32 %v1410_v33, %v497_v51  ;;  %vm582_vm6 = vcmp.gt.f32.partialorder %v488_v44, 0.0 }
  0xf7   : > { %v1076_v57 = vpop.f32.mrb[4].mxu0  ;;  %v617_v58 = vmul.f32 0.1, %v503_v49  ;;  %vm585_vm7 = vcmp.gt.f32.partialorder %v503_v49, 0.0  ;;  %v600_v0 = vmul.f32 0.1, %v418_v55  ;;  %v1436_v2 = vsel %vm582_vm6, %v488_v44, %v614_v54 }
  0xf8   : > { %v1428_v59 = vsel %vm569_vm5, %v423_v47, %v601_v53  ;;  %v427_v61 = vpop.f32.mrb[5].mxu0  ;;  %v1100_v62 = vpop.f32.mrb[4].mxu1  ;;  %v616_v1 = vmul.f32 0.1, %v498_v56  ;;  %v433_v4 = vadd.f32 %v1076_v57, %v1410_v33  ;;  %vm568_vm8 = vcmp.gt.f32.partialorder %v418_v55, 0.0 }
  0xf9   : > { %694 = vrot.lane.b32.xlu0 %v1430_v60, %s1255_s8  ;;  %v507_v63 = vpop.f32.mrb[5].mxu1  ;;  %v428_v5 = vadd.f32 %v1410_v33, %v427_v61  ;;  %v1440_v6 = vsel %vm585_vm7, %v503_v49, %v617_v58  ;;  %vm584_vm9 = vcmp.gt.f32.partialorder %v498_v56, 0.0  ;;  %v513_v10 = vadd.f32 %v1100_v62, %v1410_v33 }
  0xfa   : > { %700 = vrot.lane.b32.xlu1 %v1428_v59, %s1255_s8  ;;  %v1447_v11 = vsel %vm568_vm8, %v418_v55, %v600_v0  ;;  %v603_v13 = vmul.f32 0.1, %v433_v4  ;;  %v508_v15 = vadd.f32 %v1410_v33, %v507_v63  ;;  %v1450_v16 = vsel %vm584_vm9, %v498_v56, %v616_v1 }
  0xfb   : > { %v1079_v3 = vpop.f32.mrb[6].mxu0  ;;  %v602_v14 = vmul.f32 0.1, %v428_v5  ;;  %vm571_vm10 = vcmp.gt.f32.partialorder %v433_v4, 0.0  ;;  %vm570_vm11 = vcmp.gt.f32.partialorder %v428_v5, 0.0  ;;  %vm587_vm12 = vcmp.gt.f32.partialorder %v513_v10, 0.0 }
  0xfc   : > { %v437_v7 = vpop.f32.mrb[7].mxu0  ;;  %v1103_v8 = vpop.f32.mrb[6].mxu1  ;;  %v619_v20 = vmul.f32 0.1, %v513_v10  ;;  %v443_v21 = vadd.f32 %v1079_v3, %v1410_v33  ;;  %v618_v23 = vmul.f32 0.1, %v508_v15  ;;  %v1458_v25 = vsel %vm571_vm10, %v433_v4, %v603_v13 }
  0xfd   : > { %726 = vrot.lane.b32.xlu0 %v1436_v2, %s1255_s8  ;;  %v517_v9 = vpop.f32.mrb[7].mxu1  ;;  %v438_v24 = vadd.f32 %v1410_v33, %v437_v7  ;;  %v1460_v26 = vsel %vm570_vm11, %v428_v5, %v602_v14  ;;  %vm586_vm13 = vcmp.gt.f32.partialorder %v508_v15, 0.0  ;;  %v523_v31 = vadd.f32 %v1103_v8, %v1410_v33 }
  0xfe   : > { %732 = vrot.lane.b32.xlu1 %v1440_v6, %s1255_s8  ;;  %v605_v30 = vmul.f32 0.1, %v443_v21  ;;  %v518_v35 = vadd.f32 %v1410_v33, %v517_v9  ;;  %v1468_v36 = vsel %vm587_vm12, %v513_v10, %v619_v20  ;;  %v1470_v37 = vsel %vm586_vm13, %v508_v15, %v618_v23 }
  0xff   : > { %v1082_v12 = vpop.f32.mrb[8].mxu0  ;;  %v604_v34 = vmul.f32 0.1, %v438_v24  ;;  %vm573_vm14 = vcmp.gt.f32.partialorder %v443_v21, 0.0  ;;  %vm572_vm15 = vcmp.gt.f32.partialorder %v438_v24, 0.0  ;;  %vm589_vm0 = vcmp.gt.f32.partialorder %v523_v31, 0.0 }
 0x100   : > { %v447_v17 = vpop.f32.mrb[9].mxu0  ;;  %v1106_v18 = vpop.f32.mrb[8].mxu1  ;;  %v621_v41 = vmul.f32 0.1, %v523_v31  ;;  %v453_v42 = vadd.f32 %v1082_v12, %v1410_v33  ;;  %v620_v44 = vmul.f32 0.1, %v518_v35  ;;  %v1480_v46 = vsel %vm573_vm14, %v443_v21, %v605_v30 }
 0x101   : > { %730 = vrot.lane.b32.xlu0 %v1450_v16, %s1255_s8  ;;  %v527_v19 = vpop.f32.mrb[9].mxu1  ;;  %v448_v45 = vadd.f32 %v1410_v33, %v447_v17  ;;  %v1482_v47 = vsel %vm572_vm15, %v438_v24, %v604_v34  ;;  %vm588_vm1 = vcmp.gt.f32.partialorder %v518_v35, 0.0  ;;  %v533_v54 = vadd.f32 %v1106_v18, %v1410_v33 }
 0x102   : > { %698 = vrot.lane.b32.xlu1 %v1447_v11, %s1255_s8  ;;  %v607_v53 = vmul.f32 0.1, %v453_v42  ;;  %v528_v56 = vadd.f32 %v1410_v33, %v527_v19  ;;  %v1494_v57 = vsel %vm589_vm0, %v523_v31, %v621_v41  ;;  %v1496_v58 = vsel %vm588_vm1, %v518_v35, %v620_v44 }
 0x103   : > { %v1085_v22 = vpop.f32.mrb[10].mxu0  ;;  %v606_v55 = vmul.f32 0.1, %v448_v45  ;;  %vm575_vm2 = vcmp.gt.f32.partialorder %v453_v42, 0.0  ;;  %vm574_vm3 = vcmp.gt.f32.partialorder %v448_v45, 0.0  ;;  %vm591_vm4 = vcmp.gt.f32.partialorder %v533_v54, 0.0 }
 0x104   : > { %v457_v27 = vpop.f32.mrb[11].mxu0  ;;  %v1109_v28 = vpop.f32.mrb[10].mxu1  ;;  %v623_v61 = vmul.f32 0.1, %v533_v54  ;;  %v463_v62 = vadd.f32 %v1085_v22, %v1410_v33  ;;  %v622_v63 = vmul.f32 0.1, %v528_v56  ;;  %v1504_v1 = vsel %vm575_vm2, %v453_v42, %v607_v53 }
 0x105   : > { %702 = vrot.lane.b32.xlu0 %v1460_v26, %s1255_s8  ;;  %v537_v29 = vpop.f32.mrb[11].mxu1  ;;  %v458_v0 = vadd.f32 %v1410_v33, %v457_v27  ;;  %v1506_v3 = vsel %vm574_vm3, %v448_v45, %v606_v55  ;;  %vm590_vm5 = vcmp.gt.f32.partialorder %v528_v56, 0.0  ;;  %v543_v5 = vadd.f32 %v1109_v28, %v1410_v33 }
 0x106   : > { %704 = vrot.lane.b32.xlu1 %v1458_v25, %s1255_s8  ;;  %v609_v4 = vmul.f32 0.1, %v463_v62  ;;  %v538_v8 = vadd.f32 %v1410_v33, %v537_v29  ;;  %v1514_v9 = vsel %vm591_vm4, %v533_v54, %v623_v61  ;;  %v1516_v10 = vsel %vm590_vm5, %v528_v56, %v622_v63 }
 0x107   : > { %v1088_v32 = vpop.f32.mrb[12].mxu0  ;;  %v608_v7 = vmul.f32 0.1, %v458_v0  ;;  %vm577_vm6 = vcmp.gt.f32.partialorder %v463_v62, 0.0  ;;  %vm576_vm7 = vcmp.gt.f32.partialorder %v458_v0, 0.0  ;;  %vm593_vm8 = vcmp.gt.f32.partialorder %v543_v5, 0.0 }
 0x108   : > { %v467_v38 = vpop.f32.mrb[13].mxu0  ;;  %v1112_v39 = vpop.f32.mrb[12].mxu1  ;;  %v625_v12 = vmul.f32 0.1, %v543_v5  ;;  %v473_v13 = vadd.f32 %v1088_v32, %v1410_v33  ;;  %v624_v14 = vmul.f32 0.1, %v538_v8  ;;  %v1524_v17 = vsel %vm577_vm6, %v463_v62, %v609_v4 }
 0x109   : > { %734 = vrot.lane.b32.xlu0 %v1470_v37, %s1255_s8  ;;  %v547_v40 = vpop.f32.mrb[13].mxu1  ;;  %v468_v15 = vadd.f32 %v1410_v33, %v467_v38  ;;  %v1526_v18 = vsel %vm576_vm7, %v458_v0, %v608_v7  ;;  %vm592_vm9 = vcmp.gt.f32.partialorder %v538_v8, 0.0  ;;  %v553_v20 = vadd.f32 %v1112_v39, %v1410_v33 }
 0x10a   : > { %736 = vrot.lane.b32.xlu1 %v1468_v36, %s1255_s8  ;;  %v611_v19 = vmul.f32 0.1, %v473_v13  ;;  %v548_v22 = vadd.f32 %v1410_v33, %v547_v40  ;;  %v1534_v23 = vsel %vm593_vm8, %v543_v5, %v625_v12  ;;  %v1536_v24 = vsel %vm592_vm9, %v538_v8, %v624_v14 }
 0x10b   : > { %v1477_v43 = vpop.f32.mrb[14].mxu0  ;;  %v610_v21 = vmul.f32 0.1, %v468_v15  ;;  %vm579_vm10 = vcmp.gt.f32.partialorder %v473_v13, 0.0  ;;  %vm578_vm11 = vcmp.gt.f32.partialorder %v468_v15, 0.0  ;;  %vm595_vm12 = vcmp.gt.f32.partialorder %v553_v20, 0.0 }
 0x10c   : > { %v477_v48 = vpop.f32.mrb[15].mxu0  ;;  %v1484_v49 = vpop.f32.mrb[14].mxu1  ;;  %v627_v27 = vmul.f32 0.1, %v553_v20  ;;  %v483_v28 = vadd.f32 %v1477_v43, %v1410_v33  ;;  %v626_v29 = vmul.f32 0.1, %v548_v22  ;;  %v1545_v31 = vsel %vm579_vm10, %v473_v13, %v611_v19 }
 0x10d   : > { %706 = vrot.lane.b32.xlu0 %v1482_v47, %s1255_s8  ;;  %v1490_v51 = vpop.f32.mrb[15].mxu1  ;;  %v478_v30 = vadd.f32 %v1410_v33, %v477_v48  ;;  %v1547_v32 = vsel %vm578_vm11, %v468_v15, %v610_v21  ;;  %vm594_vm13 = vcmp.gt.f32.partialorder %v548_v22, 0.0  ;;  %v563_v35 = vadd.f32 %v1484_v49, %v1410_v33 }
 0x10e   : > { %708 = vrot.lane.b32.xlu1 %v1480_v46, %s1255_s8  ;;  %v613_v34 = vmul.f32 0.1, %v483_v28  ;;  %v558_v39 = vadd.f32 %v1410_v33, %v1490_v51  ;;  %v1557_v40 = vsel %vm595_vm12, %v553_v20, %v627_v27  ;;  %v1559_v41 = vsel %vm594_vm13, %v548_v22, %v626_v29 }
 0x10f   : > { %v612_v38 = vmul.f32 0.1, %v478_v30  ;;  %vm581_vm14 = vcmp.gt.f32.partialorder %v483_v28, 0.0  ;;  %vm580_vm15 = vcmp.gt.f32.partialorder %v478_v30, 0.0  ;;  %v629_v42 = vmul.f32 0.1, %v563_v35 }
 0x110   : > { %v628_v43 = vmul.f32 0.1, %v558_v39  ;;  %v1565_v44 = vsel %vm581_vm14, %v483_v28, %v613_v34  ;;  %vm597_vm0 = vcmp.gt.f32.partialorder %v563_v35, 0.0  ;;  %vm596_vm1 = vcmp.gt.f32.partialorder %v558_v39, 0.0 }
 0x111   : > { %738 = vrot.lane.b32.xlu0 %v1496_v58, %s1255_s8  ;;  %v1567_v45 = vsel %vm580_vm15, %v478_v30, %v612_v38  ;;  %v1573_v33 = vsel %vm597_vm0, %v563_v35, %v629_v42  ;;  %vm790_vm2 = vcmask 64512   ;;  %vm823_vm3 = vcmask 130048  }
 0x112   : > { %740 = vrot.lane.b32.xlu1 %v1494_v57, %s1255_s8  ;;  %v1575_v48 = vsel %vm596_vm1, %v558_v39, %v628_v43 }
 0x115   : > { %710 = vrot.lane.b32.xlu0 %v1506_v3, %s1255_s8 }
 0x116   : > { %712 = vrot.lane.b32.xlu1 %v1504_v1, %s1255_s8 }
 0x119   : > { %742 = vrot.lane.b32.xlu0 %v1516_v10, %s1255_s8 }
 0x11a   : > { %744 = vrot.lane.b32.xlu1 %v1514_v9, %s1255_s8 }
 0x11d   : > { %714 = vrot.lane.b32.xlu0 %v1526_v18, %s1255_s8 }
 0x11e   : > { %716 = vrot.lane.b32.xlu1 %v1524_v17, %s1255_s8 }
 0x121   : > { %746 = vrot.lane.b32.xlu0 %v1536_v24, %s1255_s8 }
 0x122   : > { %748 = vrot.lane.b32.xlu1 %v1534_v23, %s1255_s8 }
 0x125   : > { %718 = vrot.lane.b32.xlu0 %v1547_v32, %s1255_s8 }
 0x126   : > { %720 = vrot.lane.b32.xlu1 %v1545_v31, %s1255_s8 }
 0x129   : > { %750 = vrot.lane.b32.xlu0 %v1559_v41, %s1255_s8 }
 0x12a   : > { %752 = vrot.lane.b32.xlu1 %v1557_v40, %s1255_s8 }
 0x12d   : > { %722 = vrot.lane.b32.xlu0 %v1567_v45, %s1255_s8 }
 0x12e   : > { %724 = vrot.lane.b32.xlu1 %v1565_v44, %s1255_s8 }
 0x131   : > { %754 = vrot.lane.b32.xlu0 %v1575_v48, %s1255_s8 }
 0x132   : > { %756 = vrot.lane.b32.xlu1 %v1573_v33, %s1255_s8 }
 0x167   : > { %v697_v51 = vpop.permute.xlu0 %696 }
 0x168   : > { %v729_v49 = vpop.permute.xlu1 %728  ;;  %v792_v54 = vsel %vm790_vm2, %v1420_v52, %v697_v51 }
 0x169   : > { %v808_v53 = vsel %vm790_vm2, %v1418_v50, %v729_v49  ;;  %825 = vst.msk [vmem:[%s1588_s11 + $0x8] sm:$0xff] %vm823_vm3, %v792_v54  ;;  %827 = vst.msk [vmem:[%s1588_s11 + $0x18] sm:$0xff] %vm823_vm3, %v792_v54 }
 0x16a   : > { %857 = vst.msk [vmem:[%s1588_s11 + $0x108] sm:$0xff] %vm823_vm3, %v808_v53  ;;  %859 = vst.msk [vmem:[%s1588_s11 + $0x118] sm:$0xff] %vm823_vm3, %v808_v53 }
 0x16b   : > { %v695_v52 = vpop.permute.xlu0 %694 }
 0x16c   : > { %v701_v50 = vpop.permute.xlu1 %700  ;;  %v791_v56 = vsel %vm790_vm2, %v1430_v60, %v695_v52 }
 0x16d   : > { %v794_v55 = vsel %vm790_vm2, %v1428_v59, %v701_v50  ;;  %824 = vst.msk [vmem:[%s1588_s11] sm:$0xff] %vm823_vm3, %v791_v56  ;;  %826 = vst.msk [vmem:[%s1588_s11 + $0x10] sm:$0xff] %vm823_vm3, %v791_v56 }
 0x16e   : > { %829 = vst.msk [vmem:[%s1588_s11 + $0x28] sm:$0xff] %vm823_vm3, %v794_v55  ;;  %831 = vst.msk [vmem:[%s1588_s11 + $0x38] sm:$0xff] %vm823_vm3, %v794_v55 }
 0x16f   : > { %v727_v62 = vpop.permute.xlu0 %726 }
 0x170   : > { %v733_v61 = vpop.permute.xlu1 %732  ;;  %v807_v60 = vsel %vm790_vm2, %v1436_v2, %v727_v62 }
 0x171   : > { %v810_v59 = vsel %vm790_vm2, %v1440_v6, %v733_v61  ;;  %856 = vst.msk [vmem:[%s1588_s11 + $0x100] sm:$0xff] %vm823_vm3, %v807_v60  ;;  %858 = vst.msk [vmem:[%s1588_s11 + $0x110] sm:$0xff] %vm823_vm3, %v807_v60 }
 0x172   : > { %861 = vst.msk [vmem:[%s1588_s11 + $0x128] sm:$0xff] %vm823_vm3, %v810_v59  ;;  %863 = vst.msk [vmem:[%s1588_s11 + $0x138] sm:$0xff] %vm823_vm3, %v810_v59 }
 0x173   : > { %v731_v0 = vpop.permute.xlu0 %730 }
 0x174   : > { %v699_v63 = vpop.permute.xlu1 %698  ;;  %v809_v2 = vsel %vm790_vm2, %v1450_v16, %v731_v0 }
 0x175   : > { %v793_v6 = vsel %vm790_vm2, %v1447_v11, %v699_v63  ;;  %860 = vst.msk [vmem:[%s1588_s11 + $0x120] sm:$0xff] %vm823_vm3, %v809_v2  ;;  %862 = vst.msk [vmem:[%s1588_s11 + $0x130] sm:$0xff] %vm823_vm3, %v809_v2 }
 0x176   : > { %828 = vst.msk [vmem:[%s1588_s11 + $0x20] sm:$0xff] %vm823_vm3, %v793_v6  ;;  %830 = vst.msk [vmem:[%s1588_s11 + $0x30] sm:$0xff] %vm823_vm3, %v793_v6 }
 0x177   : > { %v703_v5 = vpop.permute.xlu0 %702 }
 0x178   : > { %v705_v4 = vpop.permute.xlu1 %704  ;;  %v795_v16 = vsel %vm790_vm2, %v1460_v26, %v703_v5 }
 0x179   : > { %v796_v11 = vsel %vm790_vm2, %v1458_v25, %v705_v4  ;;  %832 = vst.msk [vmem:[%s1588_s11 + $0x40] sm:$0xff] %vm823_vm3, %v795_v16  ;;  %834 = vst.msk [vmem:[%s1588_s11 + $0x50] sm:$0xff] %vm823_vm3, %v795_v16 }
 0x17a   : > { %833 = vst.msk [vmem:[%s1588_s11 + $0x48] sm:$0xff] %vm823_vm3, %v796_v11  ;;  %835 = vst.msk [vmem:[%s1588_s11 + $0x58] sm:$0xff] %vm823_vm3, %v796_v11 }
 0x17b   : > { %v735_v8 = vpop.permute.xlu0 %734 }
 0x17c   : > { %v737_v7 = vpop.permute.xlu1 %736  ;;  %v811_v26 = vsel %vm790_vm2, %v1470_v37, %v735_v8 }
 0x17d   : > { %v812_v25 = vsel %vm790_vm2, %v1468_v36, %v737_v7  ;;  %864 = vst.msk [vmem:[%s1588_s11 + $0x140] sm:$0xff] %vm823_vm3, %v811_v26  ;;  %866 = vst.msk [vmem:[%s1588_s11 + $0x150] sm:$0xff] %vm823_vm3, %v811_v26 }
 0x17e   : > { %865 = vst.msk [vmem:[%s1588_s11 + $0x148] sm:$0xff] %vm823_vm3, %v812_v25  ;;  %867 = vst.msk [vmem:[%s1588_s11 + $0x158] sm:$0xff] %vm823_vm3, %v812_v25 }
 0x17f   : > { %v707_v13 = vpop.permute.xlu0 %706 }
 0x180   : > { %v709_v12 = vpop.permute.xlu1 %708  ;;  %v797_v37 = vsel %vm790_vm2, %v1482_v47, %v707_v13 }
 0x181   : > { %v798_v36 = vsel %vm790_vm2, %v1480_v46, %v709_v12  ;;  %836 = vst.msk [vmem:[%s1588_s11 + $0x60] sm:$0xff] %vm823_vm3, %v797_v37  ;;  %838 = vst.msk [vmem:[%s1588_s11 + $0x70] sm:$0xff] %vm823_vm3, %v797_v37 }
 0x182   : > { %837 = vst.msk [vmem:[%s1588_s11 + $0x68] sm:$0xff] %vm823_vm3, %v798_v36  ;;  %839 = vst.msk [vmem:[%s1588_s11 + $0x78] sm:$0xff] %vm823_vm3, %v798_v36 }
 0x183   : > { %v739_v15 = vpop.permute.xlu0 %738 }
 0x184   : > { %v741_v14 = vpop.permute.xlu1 %740  ;;  %v813_v47 = vsel %vm790_vm2, %v1496_v58, %v739_v15 }
 0x185   : > { %v814_v46 = vsel %vm790_vm2, %v1494_v57, %v741_v14  ;;  %868 = vst.msk [vmem:[%s1588_s11 + $0x160] sm:$0xff] %vm823_vm3, %v813_v47  ;;  %870 = vst.msk [vmem:[%s1588_s11 + $0x170] sm:$0xff] %vm823_vm3, %v813_v47 }
 0x186   : > { %869 = vst.msk [vmem:[%s1588_s11 + $0x168] sm:$0xff] %vm823_vm3, %v814_v46  ;;  %871 = vst.msk [vmem:[%s1588_s11 + $0x178] sm:$0xff] %vm823_vm3, %v814_v46 }
 0x187   : > { %v711_v20 = vpop.permute.xlu0 %710 }
 0x188   : > { %v713_v19 = vpop.permute.xlu1 %712  ;;  %v799_v58 = vsel %vm790_vm2, %v1506_v3, %v711_v20 }
 0x189   : > { %v800_v57 = vsel %vm790_vm2, %v1504_v1, %v713_v19  ;;  %840 = vst.msk [vmem:[%s1588_s11 + $0x80] sm:$0xff] %vm823_vm3, %v799_v58  ;;  %842 = vst.msk [vmem:[%s1588_s11 + $0x90] sm:$0xff] %vm823_vm3, %v799_v58 }
 0x18a   : > { %841 = vst.msk [vmem:[%s1588_s11 + $0x88] sm:$0xff] %vm823_vm3, %v800_v57  ;;  %843 = vst.msk [vmem:[%s1588_s11 + $0x98] sm:$0xff] %vm823_vm3, %v800_v57 }
 0x18b   : > { %v743_v22 = vpop.permute.xlu0 %742 }
 0x18c   : > { %v745_v21 = vpop.permute.xlu1 %744  ;;  %v815_v3 = vsel %vm790_vm2, %v1516_v10, %v743_v22 }
 0x18d   : > { %v816_v1 = vsel %vm790_vm2, %v1514_v9, %v745_v21  ;;  %872 = vst.msk [vmem:[%s1588_s11 + $0x180] sm:$0xff] %vm823_vm3, %v815_v3  ;;  %874 = vst.msk [vmem:[%s1588_s11 + $0x190] sm:$0xff] %vm823_vm3, %v815_v3 }
 0x18e   : > { %873 = vst.msk [vmem:[%s1588_s11 + $0x188] sm:$0xff] %vm823_vm3, %v816_v1  ;;  %875 = vst.msk [vmem:[%s1588_s11 + $0x198] sm:$0xff] %vm823_vm3, %v816_v1 }
 0x18f   : > { %v715_v28 = vpop.permute.xlu0 %714 }
 0x190   : > { %v717_v27 = vpop.permute.xlu1 %716  ;;  %v801_v10 = vsel %vm790_vm2, %v1526_v18, %v715_v28 }
 0x191   : > { %v802_v9 = vsel %vm790_vm2, %v1524_v17, %v717_v27  ;;  %844 = vst.msk [vmem:[%s1588_s11 + $0xa0] sm:$0xff] %vm823_vm3, %v801_v10  ;;  %846 = vst.msk [vmem:[%s1588_s11 + $0xb0] sm:$0xff] %vm823_vm3, %v801_v10 }
 0x192   : > { %845 = vst.msk [vmem:[%s1588_s11 + $0xa8] sm:$0xff] %vm823_vm3, %v802_v9  ;;  %847 = vst.msk [vmem:[%s1588_s11 + $0xb8] sm:$0xff] %vm823_vm3, %v802_v9 }
 0x193   : > { %v747_v30 = vpop.permute.xlu0 %746 }
 0x194   : > { %v749_v29 = vpop.permute.xlu1 %748  ;;  %v817_v18 = vsel %vm790_vm2, %v1536_v24, %v747_v30 }
 0x195   : > { %v818_v17 = vsel %vm790_vm2, %v1534_v23, %v749_v29  ;;  %876 = vst.msk [vmem:[%s1588_s11 + $0x1a0] sm:$0xff] %vm823_vm3, %v817_v18  ;;  %878 = vst.msk [vmem:[%s1588_s11 + $0x1b0] sm:$0xff] %vm823_vm3, %v817_v18 }
 0x196   : > { %877 = vst.msk [vmem:[%s1588_s11 + $0x1a8] sm:$0xff] %vm823_vm3, %v818_v17  ;;  %879 = vst.msk [vmem:[%s1588_s11 + $0x1b8] sm:$0xff] %vm823_vm3, %v818_v17 }
 0x197   : > { %v719_v35 = vpop.permute.xlu0 %718 }
 0x198   : > { %v721_v34 = vpop.permute.xlu1 %720  ;;  %v803_v24 = vsel %vm790_vm2, %v1547_v32, %v719_v35 }
 0x199   : > { %v804_v23 = vsel %vm790_vm2, %v1545_v31, %v721_v34  ;;  %848 = vst.msk [vmem:[%s1588_s11 + $0xc0] sm:$0xff] %vm823_vm3, %v803_v24  ;;  %850 = vst.msk [vmem:[%s1588_s11 + $0xd0] sm:$0xff] %vm823_vm3, %v803_v24 }
 0x19a   : > { %849 = vst.msk [vmem:[%s1588_s11 + $0xc8] sm:$0xff] %vm823_vm3, %v804_v23  ;;  %851 = vst.msk [vmem:[%s1588_s11 + $0xd8] sm:$0xff] %vm823_vm3, %v804_v23 }
 0x19b   : > { %v751_v39 = vpop.permute.xlu0 %750 }
 0x19c   : > { %v753_v38 = vpop.permute.xlu1 %752  ;;  %v819_v32 = vsel %vm790_vm2, %v1559_v41, %v751_v39 }
 0x19d   : > { %v820_v31 = vsel %vm790_vm2, %v1557_v40, %v753_v38  ;;  %880 = vst.msk [vmem:[%s1588_s11 + $0x1c0] sm:$0xff] %vm823_vm3, %v819_v32  ;;  %882 = vst.msk [vmem:[%s1588_s11 + $0x1d0] sm:$0xff] %vm823_vm3, %v819_v32 }
 0x19e   : > { %881 = vst.msk [vmem:[%s1588_s11 + $0x1c8] sm:$0xff] %vm823_vm3, %v820_v31  ;;  %883 = vst.msk [vmem:[%s1588_s11 + $0x1d8] sm:$0xff] %vm823_vm3, %v820_v31 }
 0x19f   : > { %v723_v43 = vpop.permute.xlu0 %722 }
 0x1a0   : > { %v725_v42 = vpop.permute.xlu1 %724  ;;  %v805_v41 = vsel %vm790_vm2, %v1567_v45, %v723_v43 }
 0x1a1   : > { %v806_v40 = vsel %vm790_vm2, %v1565_v44, %v725_v42  ;;  %852 = vst.msk [vmem:[%s1588_s11 + $0xe0] sm:$0xff] %vm823_vm3, %v805_v41  ;;  %854 = vst.msk [vmem:[%s1588_s11 + $0xf0] sm:$0xff] %vm823_vm3, %v805_v41 }
 0x1a2   : > { %853 = vst.msk [vmem:[%s1588_s11 + $0xe8] sm:$0xff] %vm823_vm3, %v806_v40  ;;  %855 = vst.msk [vmem:[%s1588_s11 + $0xf8] sm:$0xff] %vm823_vm3, %v806_v40 }
 0x1a3   : > { %v755_v49 = vpop.permute.xlu0 %754 }
 0x1a4   : > { %v757_v44 = vpop.permute.xlu1 %756  ;;  %v821_v51 = vsel %vm790_vm2, %v1575_v48, %v755_v49 }
 0x1a5   : > { %v822_v45 = vsel %vm790_vm2, %v1573_v33, %v757_v44  ;;  %884 = vst.msk [vmem:[%s1588_s11 + $0x1e0] sm:$0xff] %vm823_vm3, %v821_v51  ;;  %886 = vst.msk [vmem:[%s1588_s11 + $0x1f0] sm:$0xff] %vm823_vm3, %v821_v51 }
 0x1a6   : > { %885 = vst.msk [vmem:[%s1588_s11 + $0x1e8] sm:$0xff] %vm823_vm3, %v822_v45  ;;  %887 = vst.msk [vmem:[%s1588_s11 + $0x1f8] sm:$0xff] %vm823_vm3, %v822_v45 }
 0x1a7   : > { %1188 = shalt.err (!%p1185_p5)
}
 0x1a8   : > { %s1189_s4 = scalar_lea.hbm %s1771_s23, 8192  ;;  %s1193_s7 = scalar_lea.hbm %s1839_s3, 16384 }
 0x1a9   : > { %p1190_p6 = scmp.ne.s32.totalorder %s1771_s23, %s1189_s4  ;;  %p1194_p10 = scmp.lt.u32.totalorder %s1771_s23, %s1839_s3 }
 0x1aa   : > { %p1195_p11 = scmp.lt.u32.totalorder %s1193_s7, %s1189_s4  ;;  %p1197_p13 = scmp.lt.u32.totalorder %s1189_s4, %s1771_s23 }
 0x1ab   : > { %p1191_p7 = pnand %p1190_p6, %p1318_p4 }
 0x1ac   : > { %p1196_p12 = por %p1195_p11, %p1194_p10 }
 0x1ad   : > { %p1192_p9 = pneg %p1191_p7 }
 0x1ae   : > { %p1198_p0 = por %p1197_p13, %p1196_p12 }
 0x1b0   : > { %p1199_p1 = pnand %p1198_p0, %p1192_p9 }
 0x1b2   : > { %1202 = shalt.err (!%p1199_p1)
}
 0x1b3   : > { %s1257_s11 = smov 128  }
 0x1b4   : > { %1118 = dma.vmem_to_hbm [thread:$0]  (%p1318_p4), %s1773_s19, 8192, %s1771_s23, %s1789_s26, %s1257_s11, %s1257_s11, %s1255_s8  }
 0x1b5 PF: > { %p1124_p2 = scmp.ge.s32.totalorder %s1253_s17, 2  ;;  %s920_s18 = sand.u32 1, %s1233_s12  }
 0x1b6   : > { %s921_s15 = scalar_lea.sflag [#allocation3], %s920_s18 }
 0x1b7   : > { %p1121_p3 = pnand %p1124_p2, %p1325_p8 }
 0x1b9   : > { %1228 = dma.done.wait (!%p1121_p3), %s921_s15, 8192  }
 0x1ba   : > { %1230 = vsyncadd (!%p1121_p3), %s921_s15, 4294959104  ;;  %s16_s17 = sadd.s32 1, %s1253_s17   ;;  %s1842_s12 = smov %s1237_s13 }
 0x1bb   : > { %p13_p5 = scmp.ge.s32.totalorder %s16_s17, 4   ;;  %s1843_s13 = smov %s1241_s14 }
 0x1bc   : > { %s1844_s14 = smov %s1331_s25  ;;  %s1845_s15 = smov %s1249_s16 }
 0x1bd   : > { %s1846_s16 = smov %s1848_s20  ;;  %15 = sbr.rel (!%p13_p5) target bundleno = 4 (0x4), region = 67 }
 0x1c4   :  { %926 = vsyncpa [#allocation3], 1 }
 0x1c5   :  { %928 = vsyncpa [#allocation3 + $0x1], 1 }

</bundles_post_ra>
